<compile_context>
chip_gen: v7x
topology: tpu7x:2x2x1
jax: 0.10.0
libtpu: 0.0.40
codegen_flags: <defaults>
</compile_context>

<pallas_src>
import jax
import jax.numpy as jnp
from jax.experimental import pallas as pl
from jax.experimental.pallas import tpu as pltpu

LANE = 128


def _round_up(x, m):
    return ((x + m - 1) // m) * m


# ---------------------------------------------------------------------------
# Kernels
# ---------------------------------------------------------------------------

def _bigram_train_kernel(idx_ref, tgt_ref, table_ref, logits_ref, loss_ref):
    """One tile of rows: embedding lookup + per-row cross-entropy (logits kept)."""
    tile_n, v_true = logits_ref.shape            # v_true = real vocab size
    r_pad, c_pad = table_ref.shape

    row_lane = jax.lax.broadcasted_iota(jnp.int32, (tile_n, r_pad), 1)
    one_hot = (idx_ref[...] == row_lane).astype(jnp.float32)          # (tile_n, r_pad)

    # Embedding lookup; column c_pad-1 of the table carries the precomputed
    # per-row logsumexp, so `full[:, c_pad-1]` is lse(table[idx_i, :V]).
    full = jnp.dot(one_hot, table_ref[...],
                   preferred_element_type=jnp.float32)                # (tile_n, c_pad)

    logits_ref[...] = full[:, :v_true]                                # masked store, V cols

    col_lane = jax.lax.broadcasted_iota(jnp.int32, (tile_n, c_pad), 1)
    picked = jnp.sum(jnp.where(col_lane == tgt_ref[...], full, 0.0),
                     axis=-1, keepdims=True)                          # table[idx_i, tgt_i]
    lse_i = full[:, c_pad - 1:c_pad]
    loss_ref[...] = lse_i - picked


def _bigram_loss_kernel(idx_ref, tgt_ref, table_ref, loss_ref):
    """Loss-only path: identical math but never stores logits (saves >99% of HBM writes)."""
    tile_n = loss_ref.shape[0]
    r_pad, c_pad = table_ref.shape

    row_lane = jax.lax.broadcasted_iota(jnp.int32, (tile_n, r_pad), 1)
    one_hot = (idx_ref[...] == row_lane).astype(jnp.float32)
    full = jnp.dot(one_hot, table_ref[...], preferred_element_type=jnp.float32)

    col_lane = jax.lax.broadcasted_iota(jnp.int32, (tile_n, c_pad), 1)
    picked = jnp.sum(jnp.where(col_lane == tgt_ref[...], full, 0.0),
                     axis=-1, keepdims=True)
    lse_i = full[:, c_pad - 1:c_pad]
    loss_ref[...] = lse_i - picked


def _bigram_logits_kernel(idx_ref, table_ref, logits_ref):
    """targets=None path: logits only, no cross-entropy work."""
    tile_n, v_true = logits_ref.shape
    r_pad, _ = table_ref.shape

    row_lane = jax.lax.broadcasted_iota(jnp.int32, (tile_n, r_pad), 1)
    one_hot = (idx_ref[...] == row_lane).astype(jnp.float32)
    full = jnp.dot(one_hot, table_ref[...], preferred_element_type=jnp.float32)
    logits_ref[...] = full[:, :v_true]


# ---------------------------------------------------------------------------
# Wrapper
# ---------------------------------------------------------------------------

def prepare_bigram_table(table):
    """Pad the (V, V) table for the kernel and fold the per-row logsumexp into
    a spare padded column.  Cache/hoist this across forward calls."""
    V = table.shape[0]
    r_pad = _round_up(V, LANE)            # rows: one-hot lane width
    c_pad = _round_up(V + 1, LANE)        # cols: always >= V+1 -> spare lse column

    t = table.astype(jnp.float32)
    m = jnp.max(t, axis=-1, keepdims=True)
    row_lse = (m + jnp.log(jnp.sum(jnp.exp(t - m), axis=-1, keepdims=True)))[:, 0]  # (V,)

    table_pad = jnp.zeros((r_pad, c_pad), dtype=jnp.float32)
    table_pad = table_pad.at[:V, :V].set(t)
    table_pad = table_pad.at[:V, c_pad - 1].set(row_lse)
    return table_pad


def bigram_forward(idx, targets, table, *, table_pad=None, return_logits=True):
    """Pallas equivalent of BigramLanguageModel.forward(idx, targets).

    Returns (logits, loss) with the same semantics as the PyTorch module:
      targets is None  -> ((B, T, V) logits, None)
      targets given    -> ((B*T, V) logits, scalar loss)   [return_logits=True]
                          (None,            scalar loss)   [return_logits=False]
    """
    B, T = idx.shape
    V = table.shape[0]
    N = B * T

    if table_pad is None:
        table_pad = prepare_bigram_table(table)
    r_pad, c_pad = table_pad.shape

    # Row tile: big enough to amortize per-grid-step overhead (HBM write-bound),
    # multiple of 8 (sublane).  Sweep 1024/2048/4096 per chip if needed; on v7x
    # prefer an even number of tiles so both TensorCores are fed.
    tile_n = min(2048, max(8, _round_up(N, 8)))
    n_pad = _round_up(N, tile_n)
    num_tiles = n_pad // tile_n

    idx_flat = jnp.zeros((n_pad, 1), dtype=jnp.int32).at[:N, 0].set(
        idx.reshape(N).astype(jnp.int32))

    rows_col_spec = pl.BlockSpec((tile_n, 1), lambda i: (i, 0))          # idx / tgt / loss
    table_spec = pl.BlockSpec((r_pad, c_pad), lambda i: (0, 0))          # VMEM-resident
    logits_spec = pl.BlockSpec((tile_n, V), lambda i: (i, 0))            # last dim = full V
    parallel = pltpu.CompilerParams(dimension_semantics=("parallel",))

    if targets is None:
        logits_out = pl.pallas_call(
            _bigram_logits_kernel,
            out_shape=jax.ShapeDtypeStruct((n_pad, V), jnp.float32),
            grid=(num_tiles,),
            in_specs=[rows_col_spec, table_spec],
            out_specs=logits_spec,
            compiler_params=parallel,
        )(idx_flat, table_pad)
        return logits_out[:N].reshape(B, T, V), None

    tgt_flat = jnp.zeros((n_pad, 1), dtype=jnp.int32).at[:N, 0].set(
        targets.reshape(N).astype(jnp.int32))

    if return_logits:
        logits_out, loss_rows = pl.pallas_call(
            _bigram_train_kernel,
            out_shape=(
                jax.ShapeDtypeStruct((n_pad, V), jnp.float32),
                jax.ShapeDtypeStruct((n_pad, 1), jnp.float32),
            ),
            grid=(num_tiles,),
            in_specs=[rows_col_spec, rows_col_spec, table_spec],
            out_specs=(logits_spec, rows_col_spec),
            compiler_params=parallel,
        )(idx_flat, tgt_flat, table_pad)
        logits = logits_out[:N]
    else:
        loss_rows = pl.pallas_call(
            _bigram_loss_kernel,
            out_shape=jax.ShapeDtypeStruct((n_pad, 1), jnp.float32),
            grid=(num_tiles,),
            in_specs=[rows_col_spec, rows_col_spec, table_spec],
            out_specs=rows_col_spec,
            compiler_params=parallel,
        )(idx_flat, tgt_flat, table_pad)
        logits = None

    # Mean over the true N rows (padded rows in the last tile are sliced off).
    loss = jnp.sum(loss_rows[:N, 0]) / jnp.float32(N)
    return logits, loss


# ---------------------------------------------------------------------------
# Self-test
# ---------------------------------------------------------------------------

if __name__ == "__main__":
    # Small shapes consistent with the module: batch=2, seq=8, vocab_size=65.
    B, T, V = 2, 8, 65

    key = jax.random.PRNGKey(0)
    k_table, k_idx, k_tgt = jax.random.split(key, 3)

    table = jax.random.normal(k_table, (V, V), dtype=jnp.float32)  # nn.Embedding init: N(0,1)
    idx = jax.random.randint(k_idx, (B, T), 0, V, dtype=jnp.int32)
    targets = jax.random.randint(k_tgt, (B, T), 0, V, dtype=jnp.int32)

    # Hoist/cache the padded table once (as a training loop / generate() would).
    table_pad = prepare_bigram_table(table)

    logits, loss = bigram_forward(idx, targets, table, table_pad=table_pad)
    _, loss_only = bigram_forward(idx, targets, table, table_pad=table_pad,
                                  return_logits=False)
    logits_only, no_loss = bigram_forward(idx, None, table, table_pad=table_pad)
    jax.block_until_ready((logits, loss, loss_only, logits_only))

    # Pure-JAX reference (embedding gather + mean cross-entropy).
    ref_logits = table[idx.reshape(-1)]
    ref_logp = jax.nn.log_softmax(ref_logits, axis=-1)
    ref_loss = -jnp.mean(ref_logp[jnp.arange(B * T), targets.reshape(-1)])

    assert logits.shape == (B * T, V)
    assert jnp.allclose(logits, ref_logits, atol=1e-5, rtol=1e-5)
    assert jnp.allclose(loss, ref_loss, atol=1e-5, rtol=1e-5)
    assert jnp.allclose(loss_only, ref_loss, atol=1e-5, rtol=1e-5)
    assert no_loss is None
    assert logits_only.shape == (B, T, V)
    assert jnp.allclose(logits_only, ref_logits.reshape(B, T, V), atol=1e-5, rtol=1e-5)

    print("KERNEL_OK")
</pallas_src>

<mosaic_0001>
module attributes {stable_mosaic.version = 11 : i64} {
  func.func @_bigram_train_kernel(%arg0: i32, %arg1: memref<16x1xi32, #tpu.memory_space<vmem>>, %arg2: memref<16x1xi32, #tpu.memory_space<vmem>>, %arg3: memref<128x128xf32, #tpu.memory_space<vmem>>, %arg4: memref<16x65xf32, #tpu.memory_space<vmem>>, %arg5: memref<16x1xf32, #tpu.memory_space<vmem>>) attributes {dimension_semantics = [#tpu.dimension_semantics<parallel>], iteration_bounds = array<i64: 1>, scalar_prefetch = 0 : i64, scratch_operands = 0 : i64, tpu.core_type = #tpu.core_type<tc>, window_params = [{transform_indices = @transform_0, window_bounds = array<i64: 16, 1>}, {transform_indices = @transform_1, window_bounds = array<i64: 16, 1>}, {pipeline_mode = #tpu.pipeline_mode<synchronous>, transform_indices = @transform_2, window_bounds = array<i64: 128, 128>}, {transform_indices = @transform_3, window_bounds = array<i64: 16, 65>}, {transform_indices = @transform_4, window_bounds = array<i64: 16, 1>}]} {
    %0 = tpu.iota {dimensions = array<i32: 1>} : vector<16x128xi32>
    %c0 = arith.constant 0 : index
    %c0_0 = arith.constant 0 : index
    %1 = vector.load %arg1[%c0, %c0_0] : memref<16x1xi32, #tpu.memory_space<vmem>>, vector<16x1xi32>
    %2 = vector.broadcast %1 : vector<16x1xi32> to vector<16x128xi32>
    %3 = arith.cmpi eq, %2, %0 : vector<16x128xi32>
    %4 = arith.extui %3 : vector<16x128xi1> to vector<16x128xi32>
    %5 = arith.sitofp %4 : vector<16x128xi32> to vector<16x128xf32>
    %c0_1 = arith.constant 0 : index
    %c0_2 = arith.constant 0 : index
    %6 = vector.load %arg3[%c0_1, %c0_2] : memref<128x128xf32, #tpu.memory_space<vmem>>, vector<128x128xf32>
    %cst = arith.constant dense<0.000000e+00> : vector<16x128xf32>
    %7 = tpu.matmul %5, %6, %cst {dimension_numbers = #tpu.dot_dimension_numbers<[1], [0], [0], [1], [0, 0, 1, 1], [], []>} : vector<16x128xf32>, vector<128x128xf32>, vector<16x128xf32> -> vector<16x128xf32>
    %8 = vector.extract_strided_slice %7 {offsets = [0, 0], sizes = [16, 65], strides = [1, 1]} : vector<16x128xf32> to vector<16x65xf32>
    %c0_3 = arith.constant 0 : index
    %c0_4 = arith.constant 0 : index
    %9 = vector.load %arg4[%c0_3, %c0_4] : memref<16x65xf32, #tpu.memory_space<vmem>>, vector<16x65xf32>
    tpu.vector_store %arg4[%c0_3, %c0_4], %8 {strides = array<i32>} : memref<16x65xf32, #tpu.memory_space<vmem>>, vector<16x65xf32>,
    %10 = tpu.iota {dimensions = array<i32: 1>} : vector<16x128xi32>
    %c0_5 = arith.constant 0 : index
    %c0_6 = arith.constant 0 : index
    %11 = vector.load %arg2[%c0_5, %c0_6] : memref<16x1xi32, #tpu.memory_space<vmem>>, vector<16x1xi32>
    %12 = vector.broadcast %11 : vector<16x1xi32> to vector<16x128xi32>
    %13 = arith.cmpi eq, %10, %12 : vector<16x128xi32>
    %cst_7 = arith.constant 0.000000e+00 : f32
    %14 = vector.broadcast %cst_7 : f32 to vector<16x128xf32>
    %15 = arith.select %13, %7, %14 : vector<16x128xi1>, vector<16x128xf32>
    %cst_8 = arith.constant dense<0.000000e+00> : vector<16xf32>
    %16 = vector.multi_reduction <add>, %15, %cst_8 [1] : vector<16x128xf32> to vector<16xf32>
    %17 = vector.shape_cast %16 : vector<16xf32> to vector<16x1xf32>
    %18 = vector.extract_strided_slice %7 {offsets = [0, 127], sizes = [16, 1], strides = [1, 1]} : vector<16x128xf32> to vector<16x1xf32>
    %19 = arith.subf %18, %17 : vector<16x1xf32>
    %c0_9 = arith.constant 0 : index
    %c0_10 = arith.constant 0 : index
    %20 = vector.load %arg5[%c0_9, %c0_10] : memref<16x1xf32, #tpu.memory_space<vmem>>, vector<16x1xf32>
    tpu.vector_store %arg5[%c0_9, %c0_10], %19 {strides = array<i32>} : memref<16x1xf32, #tpu.memory_space<vmem>>, vector<16x1xf32>,
    return
  }
  func.func @transform_0(%arg0: i32) -> (i32, i32) {
    %c0_i32 = arith.constant 0 : i32
    %c0_i32_0 = arith.constant 0 : i32
    return %arg0, %c0_i32 : i32, i32
  }
  func.func @transform_1(%arg0: i32) -> (i32, i32) {
    %c0_i32 = arith.constant 0 : i32
    %c0_i32_0 = arith.constant 0 : i32
    return %arg0, %c0_i32 : i32, i32
  }
  func.func @transform_2(%arg0: i32) -> (i32, i32) {
    %c0_i32 = arith.constant 0 : i32
    %c0_i32_0 = arith.constant 0 : i32
    %c0_i32_1 = arith.constant 0 : i32
    return %c0_i32, %c0_i32_0 : i32, i32
  }
  func.func @transform_3(%arg0: i32) -> (i32, i32) {
    %c0_i32 = arith.constant 0 : i32
    %c0_i32_0 = arith.constant 0 : i32
    return %arg0, %c0_i32 : i32, i32
  }
  func.func @transform_4(%arg0: i32) -> (i32, i32) {
    %c0_i32 = arith.constant 0 : i32
    %c0_i32_0 = arith.constant 0 : i32
    return %arg0, %c0_i32 : i32, i32
  }
}

</mosaic_0001>

<bundles_post_ra>
// kernel: tpu_custom_call.1
= control target key start
LH: loop header
LB: loop body
LE: loop exit
PB: predicated region body
PF: predicated region fallthrough
CT: control target
= control target key end

     0   :  { %10 = vsyncpa [#allocation3], 0  ;;  %s417_s0 = inlined_call_operand.vmem [shape: s32[16,1], index: 0, kind: input, shape index: {}]   ;;  %s418_s1 = inlined_call_operand.vmem [shape: s32[16,1], index: 1, kind: input, shape index: {}]   ;;  %s419_s2 = inlined_call_operand.hbm [shape: f32[128,128], index: 2, kind: input, shape index: {}]   ;;  %s420_s3 = inlined_call_operand.hbm [shape: f32[16,65], index: 3, kind: output, shape index: {0}]   ;;  %s421_s4 = inlined_call_operand.vmem [shape: f32[16,1], index: 4, kind: output, shape index: {1}]  }
   0x1   :  { %11 = vsyncpa [#allocation4], 0  ;;  %s337_s15 = smov [#allocation2]   ;;  %s289_s19 = scalar_lea.hbm %s419_s2, 2048 }
   0x2   :  { %s21_s16 = sshll.u32 %s337_s15, 4  ;;  %p290_p0 = scmp.ne.s32.totalorder %s419_s2, %s289_s19  ;;  %s22_s16 = int_to_ptr.vmem [resolvable:$true] %s21_s16 }
   0x3   :  { %p293_p1 = scmp.lt.u32.totalorder %s289_s19, %s419_s2 }
   0x5   :  { %p295_p2 = pnand %p293_p1, %p290_p0 }
   0x7   :  { %298 = shalt.err (!%p295_p2)
}
   0x8   :  { %s299_s24 = scalar_lea.vmem %s22_s16, 2048  ;;  %p304_p4 = scmp.lt.s32.totalorder %s22_s16, %s22_s16 }
   0x9   :  { %p300_p3 = scmp.ne.s32.totalorder %s22_s16, %s299_s24  ;;  %p305_p5 = scmp.lt.s32.totalorder %s299_s24, %s299_s24 }
   0xb   :  { %p306_p6 = por %p305_p5, %p304_p4 }
   0xd   :  { %p307_p7 = pnand %p306_p6, %p300_p3 }
   0xf   :  { %310 = shalt.err (!%p307_p7)
}
  0x10   :  { %s338_s25 = smov 128   ;;  %s339_s26 = smov 8  }
  0x11   :  { %27 = dma.hbm_to_vmem [thread:$0]  %s419_s2, 2048, %s22_s16, [#allocation3], %s338_s25, %s338_s25, %s339_s26  }
  0x12   :  { %333 = dma.done.wait [#allocation3], 2048  }
  0x13   :  { %334 = vsyncadd [#allocation3], 4294965248  ;;  %v340_v0 = vmov 0   ;;  %v33_v1 = vld [vmem:[%s417_s0] sm:$0xff]  ;;  %v48_v3 = vld [vmem:[#allocation2 + $0x8] sm:$0xff]  ;;  %v31_v29 = vlaneseq  ;;  %v341_v32 = vmov 1.0  }
  0x14   :  { %287 = vset.pattern.permute.xlu0 %v340_v0  ;;  %288 = vset.pattern.permute.xlu1 %v340_v0  ;;  %v47_v2 = vld [vmem:[#allocation2] sm:$0xff]  ;;  %v49_v4 = vld [vmem:[#allocation2 + $0x10] sm:$0xff]  ;;  %v50_v5 = vld [vmem:[#allocation2 + $0x18] sm:$0xff]  ;;  %vm138_vm2 = vcmask 531456  }
  0x15   :  { %36 = vperm.xlu0 %287, %v33_v1   ;;  %v34_v6 = vld [vmem:[%s417_s0 + $0x8] sm:$0xff]  ;;  %v248_v7 = vpack.c.bf16 %v48_v3, %v47_v2  ;;  %v252_v8 = vpack.c.bf16 %v50_v5, %v49_v4  ;;  %v51_v9 = vld [vmem:[#allocation2 + $0x20] sm:$0xff]  ;;  %v53_v13 = vld [vmem:[#allocation2 + $0x30] sm:$0xff]  ;;  %v32_v30 = vand.u32 127, %v31_v29  ;;  %s342_s0 = smov [#allocation5]  }
  0x16   :  { %v52_v10 = vld [vmem:[#allocation2 + $0x28] sm:$0xff]  ;;  %v141_v12 = vld [vmem:[%s418_s1] sm:$0xff]  ;;  %v54_v14 = vld [vmem:[#allocation2 + $0x38] sm:$0xff] }
  0x17   :  { %249 = vmatprep.subr.bf16.mxu0 %v248_v7  ;;  %v256_v11 = vpack.c.bf16 %v52_v10, %v51_v9  ;;  %144 = vperm.xlu1 %288, %v141_v12   ;;  %v142_v15 = vld [vmem:[%s418_s1 + $0x8] sm:$0xff]  ;;  %v260_v16 = vpack.c.bf16 %v54_v14, %v53_v13  ;;  %v55_v17 = vld [vmem:[#allocation2 + $0x40] sm:$0xff]  ;;  %v57_v20 = vld [vmem:[#allocation2 + $0x50] sm:$0xff]  ;;  %s175_s1 = sshll.u32 %s342_s0, 4  ;;  %s176_s1 = int_to_ptr.vmem [resolvable:$true] %s175_s1 }
  0x18   :  { %251 = vmatpush3.bf16.msra.mxu0 %v248_v7  ;;  %v56_v18 = vld [vmem:[#allocation2 + $0x48] sm:$0xff]  ;;  %v58_v21 = vld [vmem:[#allocation2 + $0x58] sm:$0xff]  ;;  %v59_v23 = vld [vmem:[#allocation2 + $0x60] sm:$0xff]  ;;  %s311_s10 = scalar_lea.vmem %s176_s1, 256  ;;  %p316_p9 = scmp.lt.s32.totalorder %s176_s1, %s176_s1 }
  0x19   :  { %39 = vperm.xlu0 %287, %v34_v6   ;;  %253 = vmatprep.subr.bf16.mxu0 %v252_v8  ;;  %v264_v19 = vpack.c.bf16 %v56_v18, %v55_v17  ;;  %v268_v22 = vpack.c.bf16 %v58_v21, %v57_v20  ;;  %v60_v24 = vld [vmem:[#allocation2 + $0x68] sm:$0xff]  ;;  %v61_v26 = vld [vmem:[#allocation2 + $0x70] sm:$0xff]  ;;  %v62_v27 = vld [vmem:[#allocation2 + $0x78] sm:$0xff]  ;;  %p312_p8 = scmp.ne.s32.totalorder %s176_s1, %s311_s10  ;;  %p317_p10 = scmp.lt.s32.totalorder %s311_s10, %s311_s10 }
  0x1a   :  { %v272_v25 = vpack.c.bf16 %v60_v24, %v59_v23  ;;  %v276_v28 = vpack.c.bf16 %v62_v27, %v61_v26 }
  0x1b   :  { %147 = vperm.xlu1 %288, %v142_v15   ;;  %p318_p11 = por %p317_p10, %p316_p9 }
  0x1c   :  { %255 = vmatpush3.bf16.msra.mxu0 %v252_v8 }
  0x1d   :  { %257 = vmatprep.subr.bf16.mxu0 %v256_v11  ;;  %p319_p12 = pnand %p318_p11, %p312_p8 }
  0x20   :  { %259 = vmatpush3.bf16.msra.mxu0 %v256_v11 }
  0x21   :  { %261 = vmatprep.subr.bf16.mxu0 %v260_v16 }
  0x24   :  { %263 = vmatpush3.bf16.msra.mxu0 %v260_v16 }
  0x25   :  { %265 = vmatprep.subr.bf16.mxu0 %v264_v19 }
  0x28   :  { %267 = vmatpush3.bf16.msra.mxu0 %v264_v19 }
  0x29   :  { %269 = vmatprep.subr.bf16.mxu0 %v268_v22 }
  0x2c   :  { %271 = vmatpush3.bf16.msra.mxu0 %v268_v22 }
  0x2d   :  { %273 = vmatprep.subr.bf16.mxu0 %v272_v25 }
  0x30   :  { %275 = vmatpush3.bf16.msra.mxu0 %v272_v25 }
  0x31   :  { %277 = vmatprep.subr.bf16.mxu0 %v276_v28 }
  0x34   :  { %279 = vmatpush3.bf16.msra.mxu0 %v276_v28 }
  0x94   :  { %v37_v31 = vpop.permute.xlu0 %36 }
  0x95   :  { %vm41_vm0 = vcmp.eq.s32.totalorder %v37_v31, %v32_v30 }
  0x96   :  { %245 = vmatprep.mubr.msk.f32.mxu0 %vm41_vm0, %v341_v32  ;;  %v145_v34 = vpop.permute.xlu1 %144 }
  0x97   :  { %vm149_vm4 = vcmp.eq.s32.totalorder %v32_v30, %v145_v34 }
  0x98   :  { %v40_v33 = vpop.permute.xlu0 %39 }
  0x99   :  { %vm42_vm1 = vcmp.eq.s32.totalorder %v40_v33, %v32_v30 }
  0x9a   :  { %246 = vmatmul.mubr.msk.f32.vlgmr.msra.gmra.mrb[0].mxu0 %vm42_vm1, %v341_v32  ;;  %v148_v35 = vpop.permute.xlu1 %147 }
  0x9b   :  { %vm150_vm3 = vcmp.eq.s32.totalorder %v32_v30, %v148_v35 }
 0x16d   :  { %v247_v36 = vpop.f32.mrb[0].mxu0 }
 0x16e   :  { %v129_v37 = vpop.f32.mrb[1].mxu0  ;;  %140 = vst.msk [vmem:[#allocation5 + $0x8] sm:$0xff] %vm138_vm2, %v247_v36  ;;  %v152_v38 = vsel %vm150_vm3, %v247_v36, 0.0 }
 0x16f   :  { %139 = vst.msk [vmem:[#allocation5] sm:$0xff] %vm138_vm2, %v129_v37  ;;  %155 = vadd.xlane.f32.xlu1 %v152_v38  ;;  %v151_v39 = vsel %vm149_vm4, %v129_v37, 0.0 }
 0x170   :  { %153 = vadd.xlane.f32.xlu0 %v151_v39 }
 0x171   :  { %322 = shalt.err (!%p319_p12)
}
 0x172   :  { %s323_s13 = scalar_lea.hbm %s420_s3, 256 }
 0x173   :  { %p324_p13 = scmp.ne.s32.totalorder %s420_s3, %s323_s13  ;;  %p327_p0 = scmp.lt.u32.totalorder %s323_s13, %s420_s3 }
 0x175   :  { %p329_p1 = pnand %p327_p0, %p324_p13 }
 0x177   :  { %332 = shalt.err (!%p329_p1)
}
 0x178   :  { %181 = dma.vmem_to_hbm [thread:$0]  %s176_s1, 256, %s420_s3, [#allocation4], %s338_s25, %s338_s25, %s339_s26   ;;  %vm167_vm5 = vcmask 7168  }
 0x179   :  { %s343_s20 = smov 1  }
 0x1fc   :  { %v156_v40 = vpop.xlane.xlu1 %155 }
 0x1fd   :  { %v158_v41 = vsub.f32 %v247_v36, %v156_v40  ;;  %v154_v42 = vpop.xlane.xlu0 %153 }
 0x1fe   :  { %v157_v43 = vsub.f32 %v129_v37, %v154_v42 }
 0x1ff   :  { %163 = vrot.lane.b32.xlu1 %v158_v41, %s343_s20 }
 0x200   :  { %161 = vrot.lane.b32.xlu0 %v157_v43, %s343_s20 }
 0x271   :  { %v164_v44 = vpop.permute.xlu1 %163 }
 0x272   :  { %169 = vst.msk [vmem:[%s421_s4 + $0x8] sm:$0xff] %vm167_vm5, %v164_v44  ;;  %v162_v45 = vpop.permute.xlu0 %161 }
 0x273   :  { %168 = vst.msk [vmem:[%s421_s4] sm:$0xff] %vm167_vm5, %v162_v45 }
 0x274   :  { %335 = dma.done.wait [#allocation4], 256  }
 0x275   :  { %336 = vsyncadd [#allocation4], 4294967040 }
 0x276   :  { %189 = vsyncpa [#allocation3], 1 }
 0x277   :  { %190 = vsyncpa [#allocation4], 1 }

</bundles_post_ra>
